<compile_context>
chip_gen: v7x
topology: tpu7x:2x2x1
jax: 0.10.0
libtpu: 0.0.40
codegen_flags: <defaults>
</compile_context>

<pallas_src>
import jax
import jax.numpy as jnp
from jax.experimental import pallas as pl
from jax.experimental.pallas import tpu as pltpu

INPUT_SIZE = 28 * 28
HIDDEN_SIZE = 100
CLASSES = 10

LANE = 128        # TPU lane width: all feature dims padded to this
SUBLANE = 8       # batch tile must be a multiple of this
MAX_TILE_B = 256  # cap batch tile so double-buffers stay tiny in VMEM (v7x-safe)


def _round_up(x, m):
    return (x + m - 1) // m * m


def _gelu_exact(v):
    # torch.nn.GELU() default: 0.5 * x * (1 + erf(x / sqrt(2)))
    inv_sqrt2 = jnp.asarray(0.7071067811865476, dtype=v.dtype)
    return 0.5 * v * (1.0 + jax.lax.erf(v * inv_sqrt2))


def mlp_kernel(x_ref,
               w1_ref, b1_ref,
               w2_ref, b2_ref,
               w3_ref, b3_ref,
               w4_ref, b4_ref,
               o_ref):
    # bf16 operands on the MXU, f32 accumulation; every activation is 128
    # lanes wide so all VPU work and the final store are unmasked/lane-dense.
    h = jnp.dot(x_ref[...], w1_ref[...], preferred_element_type=jnp.float32)
    h = _gelu_exact(h + b1_ref[...])

    h = jnp.dot(h.astype(jnp.bfloat16), w2_ref[...],
                preferred_element_type=jnp.float32)
    h = _gelu_exact(h + b2_ref[...])

    h = jnp.dot(h.astype(jnp.bfloat16), w3_ref[...],
                preferred_element_type=jnp.float32)
    h = _gelu_exact(h + b3_ref[...])

    h = jnp.dot(h.astype(jnp.bfloat16), w4_ref[...],
                preferred_element_type=jnp.float32)
    h = _gelu_exact(h + b4_ref[...])

    o_ref[...] = h.astype(o_ref.dtype)


@jax.jit
def neural_net_forward(x, params):
    """x: (B, 784) f32.  params: lane-padded bf16 weights (in, out) + f32 biases."""
    b = x.shape[0]
    tile_b = min(MAX_TILE_B, _round_up(b, SUBLANE))
    b_pad = _round_up(b, tile_b)

    x_p = x.astype(jnp.bfloat16)
    if b_pad != b:
        x_p = jnp.pad(x_p, ((0, b_pad - b), (0, 0)))

    grid = (b_pad // tile_b,)

    def resident(shape):
        # full array, resident across all batch tiles
        return pl.BlockSpec(shape, lambda i: (0, 0))

    in_specs = [
        pl.BlockSpec((tile_b, INPUT_SIZE), lambda i: (i, 0)),   # x, tiled on batch
        resident(params["w1"].shape), resident(params["b1"].shape),
        resident(params["w2"].shape), resident(params["b2"].shape),
        resident(params["w3"].shape), resident(params["b3"].shape),
        resident(params["w4"].shape), resident(params["b4"].shape),
    ]
    out_spec = pl.BlockSpec((tile_b, LANE), lambda i: (i, 0))

    flops = 2 * b_pad * (INPUT_SIZE * LANE + 3 * LANE * LANE)
    transcendentals = 4 * b_pad * LANE
    bytes_accessed = (
        x_p.size * x_p.dtype.itemsize
        + sum(int(v.size) * v.dtype.itemsize for v in params.values())
        + b_pad * LANE * 4)

    out_padded = pl.pallas_call(
        mlp_kernel,
        out_shape=jax.ShapeDtypeStruct((b_pad, LANE), jnp.float32),
        grid=grid,
        in_specs=in_specs,
        out_specs=out_spec,
        compiler_params=pltpu.CompilerParams(
            dimension_semantics=("parallel",)),
        cost_estimate=pl.CostEstimate(
            flops=flops,
            transcendentals=transcendentals,
            bytes_accessed=bytes_accessed),
    )(x_p,
      params["w1"], params["b1"],
      params["w2"], params["b2"],
      params["w3"], params["b3"],
      params["w4"], params["b4"])

    return out_padded[:b, :CLASSES]


def init_params(key, input_size=INPUT_SIZE, hidden_size=HIDDEN_SIZE,
                classes=CLASSES):
    """PyTorch nn.Linear default init (U(-1/sqrt(fan_in), 1/sqrt(fan_in))),
    stored transposed (in, out), zero-padded to lane width 128, weights bf16."""
    dims = [(input_size, hidden_size),
            (hidden_size, hidden_size),
            (hidden_size, hidden_size),
            (hidden_size, classes)]
    params = {}
    for idx, (fan_in, fan_out) in enumerate(dims, start=1):
        key, kw, kb = jax.random.split(key, 3)
        bound = 1.0 / (fan_in ** 0.5)
        w = jax.random.uniform(kw, (fan_in, fan_out), jnp.float32, -bound, bound)
        bvec = jax.random.uniform(kb, (1, fan_out), jnp.float32, -bound, bound)

        in_pad = fan_in if idx == 1 else _round_up(fan_in, LANE)
        out_pad = _round_up(fan_out, LANE)
        w_p = jnp.zeros((in_pad, out_pad), jnp.float32).at[:fan_in, :fan_out].set(w)
        b_p = jnp.zeros((1, out_pad), jnp.float32).at[:, :fan_out].set(bvec)

        params[f"w{idx}"] = w_p.astype(jnp.bfloat16)
        params[f"b{idx}"] = b_p                     # f32 bias, added to f32 acc
    return params


def reference_forward(x, params):
    """Pure-JAX reference with identical (bf16 operand / f32 acc) numerics."""
    h = x.astype(jnp.bfloat16)
    for idx in range(1, 5):
        h = jnp.dot(h, params[f"w{idx}"], preferred_element_type=jnp.float32)
        h = _gelu_exact(h + params[f"b{idx}"])
        if idx < 4:
            h = h.astype(jnp.bfloat16)
    return h[:, :CLASSES]


if __name__ == "__main__":
    batch = 8

    key = jax.random.PRNGKey(0)
    key, kx = jax.random.split(key)
    x = jax.random.normal(kx, (batch, INPUT_SIZE), dtype=jnp.float32)

    params = init_params(key)

    out = neural_net_forward(x, params)
    out = jax.block_until_ready(out)

    assert out.shape == (batch, CLASSES), out.shape
    assert out.dtype == jnp.float32, out.dtype

    ref = reference_forward(x, params)
    max_err = float(jnp.max(jnp.abs(out - ref)))
    assert max_err < 1e-2, f"mismatch vs reference: {max_err}"

    print("KERNEL_OK")
</pallas_src>

<mosaic_0001>
module attributes {stable_mosaic.version = 11 : i64} {
  func.func @mlp_kernel(%arg0: i32, %arg1: memref<8x784xbf16, #tpu.memory_space<vmem>>, %arg2: memref<784x128xbf16, #tpu.memory_space<vmem>>, %arg3: memref<1x128xf32, #tpu.memory_space<vmem>>, %arg4: memref<128x128xbf16, #tpu.memory_space<vmem>>, %arg5: memref<1x128xf32, #tpu.memory_space<vmem>>, %arg6: memref<128x128xbf16, #tpu.memory_space<vmem>>, %arg7: memref<1x128xf32, #tpu.memory_space<vmem>>, %arg8: memref<128x128xbf16, #tpu.memory_space<vmem>>, %arg9: memref<1x128xf32, #tpu.memory_space<vmem>>, %arg10: memref<8x128xf32, #tpu.memory_space<vmem>>) attributes {dimension_semantics = [#tpu.dimension_semantics<parallel>], iteration_bounds = array<i64: 1>, scalar_prefetch = 0 : i64, scratch_operands = 0 : i64, tpu.core_type = #tpu.core_type<tc>, window_params = [{transform_indices = @transform_0, window_bounds = array<i64: 8, 784>}, {pipeline_mode = #tpu.pipeline_mode<synchronous>, transform_indices = @transform_1, window_bounds = array<i64: 784, 128>}, {pipeline_mode = #tpu.pipeline_mode<synchronous>, transform_indices = @transform_2, window_bounds = array<i64: 1, 128>}, {pipeline_mode = #tpu.pipeline_mode<synchronous>, transform_indices = @transform_3, window_bounds = array<i64: 128, 128>}, {pipeline_mode = #tpu.pipeline_mode<synchronous>, transform_indices = @transform_4, window_bounds = array<i64: 1, 128>}, {pipeline_mode = #tpu.pipeline_mode<synchronous>, transform_indices = @transform_5, window_bounds = array<i64: 128, 128>}, {pipeline_mode = #tpu.pipeline_mode<synchronous>, transform_indices = @transform_6, window_bounds = array<i64: 1, 128>}, {pipeline_mode = #tpu.pipeline_mode<synchronous>, transform_indices = @transform_7, window_bounds = array<i64: 128, 128>}, {pipeline_mode = #tpu.pipeline_mode<synchronous>, transform_indices = @transform_8, window_bounds = array<i64: 1, 128>}, {transform_indices = @transform_9, window_bounds = array<i64: 8, 128>}]} {
    %c0 = arith.constant 0 : index
    %c0_0 = arith.constant 0 : index
    %0 = vector.load %arg1[%c0, %c0_0] : memref<8x784xbf16, #tpu.memory_space<vmem>>, vector<8x784xbf16>
    %c0_1 = arith.constant 0 : index
    %c0_2 = arith.constant 0 : index
    %1 = vector.load %arg2[%c0_1, %c0_2] : memref<784x128xbf16, #tpu.memory_space<vmem>>, vector<784x128xbf16>
    %cst = arith.constant dense<0.000000e+00> : vector<8x128xf32>
    %2 = tpu.matmul %0, %1, %cst {dimension_numbers = #tpu.dot_dimension_numbers<[1], [0], [0], [1], [0, 0, 1, 1], [], []>} : vector<8x784xbf16>, vector<784x128xbf16>, vector<8x128xf32> -> vector<8x128xf32>
    %c0_3 = arith.constant 0 : index
    %c0_4 = arith.constant 0 : index
    %3 = vector.load %arg3[%c0_3, %c0_4] : memref<1x128xf32, #tpu.memory_space<vmem>>, vector<1x128xf32>
    %4 = vector.broadcast %3 : vector<1x128xf32> to vector<8x128xf32>
    %5 = arith.addf %2, %4 : vector<8x128xf32>
    %cst_5 = arith.constant 5.000000e-01 : f32
    %6 = vector.broadcast %cst_5 : f32 to vector<8x128xf32>
    %7 = arith.mulf %6, %5 : vector<8x128xf32>
    %cst_6 = arith.constant 0.707106769 : f32
    %8 = vector.broadcast %cst_6 : f32 to vector<8x128xf32>
    %9 = arith.mulf %5, %8 : vector<8x128xf32>
    %10 = math.erf %9 : vector<8x128xf32>
    %cst_7 = arith.constant 1.000000e+00 : f32
    %11 = vector.broadcast %cst_7 : f32 to vector<8x128xf32>
    %12 = arith.addf %11, %10 : vector<8x128xf32>
    %13 = arith.mulf %7, %12 : vector<8x128xf32>
    %14 = arith.truncf %13 : vector<8x128xf32> to vector<8x128xbf16>
    %c0_8 = arith.constant 0 : index
    %c0_9 = arith.constant 0 : index
    %15 = vector.load %arg4[%c0_8, %c0_9] : memref<128x128xbf16, #tpu.memory_space<vmem>>, vector<128x128xbf16>
    %cst_10 = arith.constant dense<0.000000e+00> : vector<8x128xf32>
    %16 = tpu.matmul %14, %15, %cst_10 {dimension_numbers = #tpu.dot_dimension_numbers<[1], [0], [0], [1], [0, 0, 1, 1], [], []>} : vector<8x128xbf16>, vector<128x128xbf16>, vector<8x128xf32> -> vector<8x128xf32>
    %c0_11 = arith.constant 0 : index
    %c0_12 = arith.constant 0 : index
    %17 = vector.load %arg5[%c0_11, %c0_12] : memref<1x128xf32, #tpu.memory_space<vmem>>, vector<1x128xf32>
    %18 = vector.broadcast %17 : vector<1x128xf32> to vector<8x128xf32>
    %19 = arith.addf %16, %18 : vector<8x128xf32>
    %cst_13 = arith.constant 5.000000e-01 : f32
    %20 = vector.broadcast %cst_13 : f32 to vector<8x128xf32>
    %21 = arith.mulf %20, %19 : vector<8x128xf32>
    %cst_14 = arith.constant 0.707106769 : f32
    %22 = vector.broadcast %cst_14 : f32 to vector<8x128xf32>
    %23 = arith.mulf %19, %22 : vector<8x128xf32>
    %24 = math.erf %23 : vector<8x128xf32>
    %cst_15 = arith.constant 1.000000e+00 : f32
    %25 = vector.broadcast %cst_15 : f32 to vector<8x128xf32>
    %26 = arith.addf %25, %24 : vector<8x128xf32>
    %27 = arith.mulf %21, %26 : vector<8x128xf32>
    %28 = arith.truncf %27 : vector<8x128xf32> to vector<8x128xbf16>
    %c0_16 = arith.constant 0 : index
    %c0_17 = arith.constant 0 : index
    %29 = vector.load %arg6[%c0_16, %c0_17] : memref<128x128xbf16, #tpu.memory_space<vmem>>, vector<128x128xbf16>
    %cst_18 = arith.constant dense<0.000000e+00> : vector<8x128xf32>
    %30 = tpu.matmul %28, %29, %cst_18 {dimension_numbers = #tpu.dot_dimension_numbers<[1], [0], [0], [1], [0, 0, 1, 1], [], []>} : vector<8x128xbf16>, vector<128x128xbf16>, vector<8x128xf32> -> vector<8x128xf32>
    %c0_19 = arith.constant 0 : index
    %c0_20 = arith.constant 0 : index
    %31 = vector.load %arg7[%c0_19, %c0_20] : memref<1x128xf32, #tpu.memory_space<vmem>>, vector<1x128xf32>
    %32 = vector.broadcast %31 : vector<1x128xf32> to vector<8x128xf32>
    %33 = arith.addf %30, %32 : vector<8x128xf32>
    %cst_21 = arith.constant 5.000000e-01 : f32
    %34 = vector.broadcast %cst_21 : f32 to vector<8x128xf32>
    %35 = arith.mulf %34, %33 : vector<8x128xf32>
    %cst_22 = arith.constant 0.707106769 : f32
    %36 = vector.broadcast %cst_22 : f32 to vector<8x128xf32>
    %37 = arith.mulf %33, %36 : vector<8x128xf32>
    %38 = math.erf %37 : vector<8x128xf32>
    %cst_23 = arith.constant 1.000000e+00 : f32
    %39 = vector.broadcast %cst_23 : f32 to vector<8x128xf32>
    %40 = arith.addf %39, %38 : vector<8x128xf32>
    %41 = arith.mulf %35, %40 : vector<8x128xf32>
    %42 = arith.truncf %41 : vector<8x128xf32> to vector<8x128xbf16>
    %c0_24 = arith.constant 0 : index
    %c0_25 = arith.constant 0 : index
    %43 = vector.load %arg8[%c0_24, %c0_25] : memref<128x128xbf16, #tpu.memory_space<vmem>>, vector<128x128xbf16>
    %cst_26 = arith.constant dense<0.000000e+00> : vector<8x128xf32>
    %44 = tpu.matmul %42, %43, %cst_26 {dimension_numbers = #tpu.dot_dimension_numbers<[1], [0], [0], [1], [0, 0, 1, 1], [], []>} : vector<8x128xbf16>, vector<128x128xbf16>, vector<8x128xf32> -> vector<8x128xf32>
    %c0_27 = arith.constant 0 : index
    %c0_28 = arith.constant 0 : index
    %45 = vector.load %arg9[%c0_27, %c0_28] : memref<1x128xf32, #tpu.memory_space<vmem>>, vector<1x128xf32>
    %46 = vector.broadcast %45 : vector<1x128xf32> to vector<8x128xf32>
    %47 = arith.addf %44, %46 : vector<8x128xf32>
    %cst_29 = arith.constant 5.000000e-01 : f32
    %48 = vector.broadcast %cst_29 : f32 to vector<8x128xf32>
    %49 = arith.mulf %48, %47 : vector<8x128xf32>
    %cst_30 = arith.constant 0.707106769 : f32
    %50 = vector.broadcast %cst_30 : f32 to vector<8x128xf32>
    %51 = arith.mulf %47, %50 : vector<8x128xf32>
    %52 = math.erf %51 : vector<8x128xf32>
    %cst_31 = arith.constant 1.000000e+00 : f32
    %53 = vector.broadcast %cst_31 : f32 to vector<8x128xf32>
    %54 = arith.addf %53, %52 : vector<8x128xf32>
    %55 = arith.mulf %49, %54 : vector<8x128xf32>
    %c0_32 = arith.constant 0 : index
    %c0_33 = arith.constant 0 : index
    %56 = vector.load %arg10[%c0_32, %c0_33] : memref<8x128xf32, #tpu.memory_space<vmem>>, vector<8x128xf32>
    tpu.vector_store %arg10[%c0_32, %c0_33], %55 {strides = array<i32>} : memref<8x128xf32, #tpu.memory_space<vmem>>, vector<8x128xf32>,
    return
  }
  func.func @transform_0(%arg0: i32) -> (i32, i32) {
    %c0_i32 = arith.constant 0 : i32
    %c0_i32_0 = arith.constant 0 : i32
    return %arg0, %c0_i32 : i32, i32
  }
  func.func @transform_1(%arg0: i32) -> (i32, i32) {
    %c0_i32 = arith.constant 0 : i32
    %c0_i32_0 = arith.constant 0 : i32
    %c0_i32_1 = arith.constant 0 : i32
    return %c0_i32, %c0_i32_0 : i32, i32
  }
  func.func @transform_2(%arg0: i32) -> (i32, i32) {
    %c0_i32 = arith.constant 0 : i32
    %c0_i32_0 = arith.constant 0 : i32
    %c0_i32_1 = arith.constant 0 : i32
    return %c0_i32, %c0_i32_0 : i32, i32
  }
  func.func @transform_3(%arg0: i32) -> (i32, i32) {
    %c0_i32 = arith.constant 0 : i32
    %c0_i32_0 = arith.constant 0 : i32
    %c0_i32_1 = arith.constant 0 : i32
    return %c0_i32, %c0_i32_0 : i32, i32
  }
  func.func @transform_4(%arg0: i32) -> (i32, i32) {
    %c0_i32 = arith.constant 0 : i32
    %c0_i32_0 = arith.constant 0 : i32
    %c0_i32_1 = arith.constant 0 : i32
    return %c0_i32, %c0_i32_0 : i32, i32
  }
  func.func @transform_5(%arg0: i32) -> (i32, i32) {
    %c0_i32 = arith.constant 0 : i32
    %c0_i32_0 = arith.constant 0 : i32
    %c0_i32_1 = arith.constant 0 : i32
    return %c0_i32, %c0_i32_0 : i32, i32
  }
  func.func @transform_6(%arg0: i32) -> (i32, i32) {
    %c0_i32 = arith.constant 0 : i32
    %c0_i32_0 = arith.constant 0 : i32
    %c0_i32_1 = arith.constant 0 : i32
    return %c0_i32, %c0_i32_0 : i32, i32
  }
  func.func @transform_7(%arg0: i32) -> (i32, i32) {
    %c0_i32 = arith.constant 0 : i32
    %c0_i32_0 = arith.constant 0 : i32
    %c0_i32_1 = arith.constant 0 : i32
    return %c0_i32, %c0_i32_0 : i32, i32
  }
  func.func @transform_8(%arg0: i32) -> (i32, i32) {
    %c0_i32 = arith.constant 0 : i32
    %c0_i32_0 = arith.constant 0 : i32
    %c0_i32_1 = arith.constant 0 : i32
    return %c0_i32, %c0_i32_0 : i32, i32
  }
  func.func @transform_9(%arg0: i32) -> (i32, i32) {
    %c0_i32 = arith.constant 0 : i32
    %c0_i32_0 = arith.constant 0 : i32
    return %arg0, %c0_i32 : i32, i32
  }
}

</mosaic_0001>

<bundles_post_ra>
// kernel: neural_net_forward.1
= control target key start
LH: loop header
LB: loop body
LE: loop exit
PB: predicated region body
PF: predicated region fallthrough
CT: control target
= control target key end

     0   :  { %14 = vsyncpa [#allocation3], 0  ;;  %s1678_s0 = inlined_call_operand.vmem [shape: bf16[8,784], index: 0, kind: input, shape index: {}]   ;;  %s1679_s1 = inlined_call_operand.hbm [shape: bf16[784,128], index: 1, kind: input, shape index: {}]   ;;  %s1680_s2 = inlined_call_operand.vmem [shape: f32[1,128], index: 2, kind: input, shape index: {}]   ;;  %s1681_s3 = inlined_call_operand.vmem [shape: bf16[128,128], index: 3, kind: input, shape index: {}]   ;;  %s1682_s4 = inlined_call_operand.vmem [shape: f32[1,128], index: 4, kind: input, shape index: {}]   ;;  %s1683_s5 = inlined_call_operand.hbm [shape: bf16[128,128], index: 5, kind: input, shape index: {}]   ;;  %s1684_s6 = inlined_call_operand.vmem [shape: f32[1,128], index: 6, kind: input, shape index: {}]   ;;  %s1685_s7 = inlined_call_operand.hbm [shape: bf16[128,128], index: 7, kind: input, shape index: {}]   ;;  %s1686_s8 = inlined_call_operand.vmem [shape: f32[1,128], index: 8, kind: input, shape index: {}]   ;;  %s1687_s9 = inlined_call_operand.hbm [shape: f32[8,128], index: 9, kind: output, shape index: {}]  }
   0x1   :  { %15 = vsyncpa [#allocation6], 0 }
   0x2   :  { %16 = vsyncpa [#allocation4], 0  ;;  %s1475_s30 = smov [#allocation5]   ;;  %s1476_s11 = smov [#allocation2]  }
   0x3   :  { %s42_s10 = sshll.u32 %s1475_s30, 4  ;;  %s24_s12 = sshll.u32 %s1476_s11, 4  ;;  %s43_s10 = int_to_ptr.vmem [resolvable:$true] %s42_s10  ;;  %s1533_s12 = int_to_ptr.vmem [resolvable:$true] %s24_s12 }
   0x4   :  { %s1381_s15 = scalar_lea.hbm %s1683_s5, 1024 }
   0x5   :  { %p1382_p0 = scmp.ne.s32.totalorder %s1683_s5, %s1381_s15  ;;  %p1385_p1 = scmp.lt.u32.totalorder %s1381_s15, %s1683_s5 }
   0x7   :  { %p1387_p2 = pnand %p1385_p1, %p1382_p0 }
   0x9   :  { %1390 = shalt.err (!%p1387_p2)
}
   0xa   :  { %s1391_s20 = scalar_lea.vmem %s43_s10, 1024  ;;  %p1396_p4 = scmp.lt.s32.totalorder %s43_s10, %s43_s10 }
   0xb   :  { %p1392_p3 = scmp.ne.s32.totalorder %s43_s10, %s1391_s20  ;;  %p1397_p5 = scmp.lt.s32.totalorder %s1391_s20, %s1391_s20 }
   0xd   :  { %p1398_p6 = por %p1397_p5, %p1396_p4 }
   0xf   :  { %p1399_p7 = pnand %p1398_p6, %p1392_p3 }
  0x11   :  { %1402 = shalt.err (!%p1399_p7)
}
  0x12   :  { %s1477_s21 = smov 64   ;;  %s1478_s22 = smov 4  }
  0x13   :  { %48 = dma.hbm_to_vmem [thread:$0]  %s1683_s5, 1024, %s43_s10, [#allocation6], %s1477_s21, %s1477_s21, %s1478_s22  }
  0x14   :  { %s1403_s27 = scalar_lea.hbm %s1679_s1, 6272 }
  0x15   :  { %p1404_p8 = scmp.ne.s32.totalorder %s1679_s1, %s1403_s27  ;;  %p1407_p9 = scmp.lt.u32.totalorder %s1403_s27, %s1679_s1 }
  0x17   :  { %p1409_p10 = pnand %p1407_p9, %p1404_p8 }
  0x19   :  { %1412 = shalt.err (!%p1409_p10)
}
  0x1a   :  { %s1413_s13 = scalar_lea.vmem %s1533_s12, 6272  ;;  %p1418_p12 = scmp.lt.s32.totalorder %s1533_s12, %s1533_s12 }
  0x1b   :  { %p1414_p11 = scmp.ne.s32.totalorder %s1533_s12, %s1413_s13  ;;  %p1419_p13 = scmp.lt.s32.totalorder %s1413_s13, %s1413_s13 }
  0x1d   :  { %p1420_p0 = por %p1419_p13, %p1418_p12 }
  0x1f   :  { %p1421_p1 = pnand %p1420_p0, %p1414_p11 }
  0x21   :  { %1424 = shalt.err (!%p1421_p1)
}
  0x22   :  { %30 = dma.hbm_to_vmem [thread:$0]  %s1679_s1, 6272, %s1533_s12, [#allocation3], %s1477_s21, %s1477_s21, %s1478_s22  }
  0x23   :  { %s1479_s14 = smov [#allocation7]   ;;  %s1425_s18 = scalar_lea.hbm %s1685_s7, 1024 }
  0x24   :  { %s56_s15 = sshll.u32 %s1479_s14, 4  ;;  %p1426_p2 = scmp.ne.s32.totalorder %s1685_s7, %s1425_s18  ;;  %s57_s15 = int_to_ptr.vmem [resolvable:$true] %s56_s15 }
  0x25   :  { %p1429_p3 = scmp.lt.u32.totalorder %s1425_s18, %s1685_s7 }
  0x27   :  { %p1431_p4 = pnand %p1429_p3, %p1426_p2 }
  0x29   :  { %1434 = shalt.err (!%p1431_p4)
}
  0x2a   :  { %s1435_s25 = scalar_lea.vmem %s57_s15, 1024  ;;  %p1440_p6 = scmp.lt.s32.totalorder %s57_s15, %s57_s15 }
  0x2b   :  { %p1436_p5 = scmp.ne.s32.totalorder %s57_s15, %s1435_s25  ;;  %p1441_p7 = scmp.lt.s32.totalorder %s1435_s25, %s1435_s25 }
  0x2d   :  { %p1442_p8 = por %p1441_p7, %p1440_p6 }
  0x2f   :  { %p1443_p9 = pnand %p1442_p8, %p1436_p5 }
  0x31   :  { %1446 = shalt.err (!%p1443_p9)
}
  0x32   :  { %62 = dma.hbm_to_vmem [thread:$0]  %s1685_s7, 1024, %s57_s15, [#allocation6], %s1477_s21, %s1477_s21, %s1478_s22  }
  0x33   :  { %1469 = dma.done.wait [#allocation3], 6272  }
  0x34   :  { %1470 = vsyncadd [#allocation3], 4294961024 }
  0x35   :  { %1471 = dma.done.wait [#allocation6], 2048  }
  0x36   :  { %1472 = vsyncadd [#allocation6], 4294965248  ;;  %v1293_v0 = vld [vmem:[#allocation2 + $0x40] sm:$0xff]   ;;  %v1297_v4 = vld [vmem:[#allocation2 + $0x48] sm:$0xff]   ;;  %v1480_v43 = vmov 0.0   ;;  %vm1481_vm0 = vmmov 0  }
  0x37   :  { %v1294_v1 = vld [vmem:[#allocation2] sm:$0xff]   ;;  %1124 = vmatprep.subr.bf16.mxu0 %v1293_v0  ;;  %v1298_v5 = vld [vmem:[#allocation2 + $0x8] sm:$0xff]   ;;  %v1301_v8 = vld [vmem:[#allocation2 + $0x50] sm:$0xff]   ;;  %vm502_vm1 = vcmask 130048  }
  0x38   :  { %v1295_v2 = vld [vmem:[#allocation2 + $0xc0] sm:$0xff]   ;;  %1125 = vmatpush3.bf16.msra.mxu0 %v1294_v1  ;;  %v1299_v6 = vld [vmem:[#allocation2 + $0xc8] sm:$0xff]   ;;  %v1302_v9 = vld [vmem:[#allocation2 + $0x10] sm:$0xff]  }
  0x39   :  { %v1296_v3 = vld [vmem:[#allocation2 + $0x80] sm:$0xff]   ;;  %1146 = vmatprep.subr.bf16.mxu1 %v1295_v2  ;;  %1126 = vmatprep.subr.bf16.mxu0 %v1297_v4  ;;  %v1300_v7 = vld [vmem:[#allocation2 + $0x88] sm:$0xff]   ;;  %v1303_v10 = vld [vmem:[#allocation2 + $0xd0] sm:$0xff]  }
  0x3a   :  { %1147 = vmatpush3.bf16.msra.mxu1 %v1296_v3  ;;  %v1304_v11 = vld [vmem:[#allocation2 + $0x90] sm:$0xff]   ;;  %v1305_v12 = vld [vmem:[#allocation2 + $0x58] sm:$0xff]   ;;  %v1309_v16 = vld [vmem:[#allocation2 + $0x60] sm:$0xff]  }
  0x3b   :  { %1148 = vmatprep.subr.bf16.mxu1 %v1299_v6  ;;  %v1306_v13 = vld [vmem:[#allocation2 + $0x18] sm:$0xff]   ;;  %v1310_v17 = vld [vmem:[#allocation2 + $0x20] sm:$0xff]   ;;  %v1313_v20 = vld [vmem:[#allocation2 + $0x68] sm:$0xff]  }
  0x3c   :  { %1127 = vmatpush3.bf16.msra.mxu0 %v1298_v5  ;;  %v1307_v14 = vld [vmem:[#allocation2 + $0xd8] sm:$0xff]   ;;  %v1311_v18 = vld [vmem:[#allocation2 + $0xe0] sm:$0xff]   ;;  %v1314_v21 = vld [vmem:[#allocation2 + $0x28] sm:$0xff]  }
  0x3d   :  { %1128 = vmatprep.subr.bf16.mxu0 %v1301_v8  ;;  %v1308_v15 = vld [vmem:[#allocation2 + $0x98] sm:$0xff]   ;;  %v1312_v19 = vld [vmem:[#allocation2 + $0xa0] sm:$0xff]   ;;  %v1315_v22 = vld [vmem:[#allocation2 + $0xe8] sm:$0xff]  }
  0x3e   :  { %1149 = vmatpush3.bf16.msra.mxu1 %v1300_v7  ;;  %v1316_v23 = vld [vmem:[#allocation2 + $0xa8] sm:$0xff]   ;;  %v1317_v24 = vld [vmem:[#allocation2 + $0x70] sm:$0xff]   ;;  %v1321_v28 = vld [vmem:[#allocation2 + $0x78] sm:$0xff]  }
  0x3f   :  { %1150 = vmatprep.subr.bf16.mxu1 %v1303_v10  ;;  %v1318_v25 = vld [vmem:[#allocation2 + $0x30] sm:$0xff]   ;;  %v1322_v29 = vld [vmem:[#allocation2 + $0x38] sm:$0xff]   ;;  %v75_v31 = vld [vmem:[%s1678_s0] sm:$0xff] }
  0x40   :  { %1129 = vmatpush3.bf16.msra.mxu0 %v1302_v9  ;;  %v1319_v26 = vld [vmem:[#allocation2 + $0xf0] sm:$0xff]   ;;  %v1323_v30 = vld [vmem:[#allocation2 + $0xf8] sm:$0xff]   ;;  %v1040_v32 = vcombine.low %v75_v31, %v75_v31  ;;  %v1041_v33 = vcombine.high %v75_v31, %v75_v31  ;;  %v1327_v35 = vld [vmem:[#allocation2 + $0x140] sm:$0xff]  }
  0x41   :  { %1130 = vmatprep.subr.bf16.mxu0 %v1305_v12  ;;  %v1320_v27 = vld [vmem:[#allocation2 + $0xb0] sm:$0xff]   ;;  %v1326_v34 = vld [vmem:[#allocation2 + $0xb8] sm:$0xff]   ;;  %v76_v36 = vld [vmem:[%s1678_s0 + $0x8] sm:$0xff] }
  0x42   :  { %1151 = vmatpush3.bf16.msra.mxu1 %v1304_v11  ;;  %538 = vmatprep.mubr.bf16.mxu0 %v1041_v33  ;;  %v1042_v37 = vcombine.low %v76_v36, %v76_v36  ;;  %v1043_v38 = vcombine.high %v76_v36, %v76_v36  ;;  %v1330_v39 = vld [vmem:[#allocation2 + $0x100] sm:$0xff]   ;;  %v1331_v40 = vld [vmem:[#allocation2 + $0x148] sm:$0xff]   ;;  %v1333_v42 = vld [vmem:[#allocation2 + $0x150] sm:$0xff]  }
  0x43   :  { %1152 = vmatprep.subr.bf16.mxu1 %v1307_v14  ;;  %v1332_v41 = vld [vmem:[#allocation2 + $0x108] sm:$0xff]   ;;  %v1334_v44 = vld [vmem:[#allocation2 + $0x110] sm:$0xff]   ;;  %v1335_v45 = vld [vmem:[#allocation2 + $0x158] sm:$0xff]  }
  0x44   :  { %1131 = vmatpush3.bf16.msra.mxu0 %v1306_v13  ;;  %578 = vmatprep.mubr.bf16.mxu1 %v1043_v38  ;;  %v1336_v46 = vld [vmem:[#allocation2 + $0x118] sm:$0xff]   ;;  %v1337_v47 = vld [vmem:[#allocation2 + $0x160] sm:$0xff]   ;;  %v1339_v49 = vld [vmem:[#allocation2 + $0x168] sm:$0xff]  }
  0x45   :  { %1132 = vmatprep.subr.bf16.mxu0 %v1309_v16  ;;  %v1338_v48 = vld [vmem:[#allocation2 + $0x120] sm:$0xff]   ;;  %v77_v51 = vld [vmem:[%s1678_s0 + $0x10] sm:$0xff]  ;;  %v1340_v52 = vld [vmem:[#allocation2 + $0x128] sm:$0xff]  }
  0x46   :  { %1153 = vmatpush3.bf16.msra.mxu1 %v1308_v15  ;;  %v1345_v50 = vld [vmem:[#allocation2 + $0x180] sm:$0xff]   ;;  %v1045_v53 = vcombine.high %v77_v51, %v77_v51  ;;  %v1348_v54 = vld [vmem:[%s1678_s0 + $0x18] ss:$0 sps:$4 sm:$0xff]   ;;  %v1341_v55 = vld [vmem:[#allocation2 + $0x170] sm:$0xff]   ;;  %v1044_v59 = vcombine.low %v77_v51, %v77_v51 }
  0x47   :  { %1154 = vmatprep.subr.bf16.mxu1 %v1311_v18  ;;  %v1342_v56 = vld [vmem:[#allocation2 + $0x130] sm:$0xff]   ;;  %v1343_v57 = vld [vmem:[#allocation2 + $0x178] sm:$0xff]   ;;  %v1349_v60 = vld [vmem:[%s1681_s3] sm:$0xff]  }
  0x48   :  { %1133 = vmatpush3.bf16.msra.mxu0 %v1310_v17  ;;  %v1344_v58 = vld [vmem:[#allocation2 + $0x138] sm:$0xff]   ;;  %v1350_v61 = vld [vmem:[%s1681_s3 + $0x8] sm:$0xff]   ;;  %v1351_v62 = vld [vmem:[%s1681_s3 + $0x10] sm:$0xff]  }
  0x49   :  { %1134 = vmatprep.subr.bf16.mxu0 %v1313_v20  ;;  %v1352_v63 = vld [vmem:[%s1681_s3 + $0x18] sm:$0xff]   ;;  %v1353_v0 = vld [vmem:[%s1681_s3 + $0x20] sm:$0xff]   ;;  %v1354_v1 = vld [vmem:[%s1681_s3 + $0x28] sm:$0xff]  }
  0x4a   :  { %1155 = vmatpush3.bf16.msra.mxu1 %v1312_v19  ;;  %v1355_v2 = vld [vmem:[%s1681_s3 + $0x30] sm:$0xff]   ;;  %v1356_v3 = vld [vmem:[%s1681_s3 + $0x38] sm:$0xff]   ;;  %v1357_v4 = vld [vmem:[#allocation5] sm:$0xff]  }
  0x4b   :  { %1156 = vmatprep.subr.bf16.mxu1 %v1315_v22  ;;  %v1358_v5 = vld [vmem:[#allocation5 + $0x8] sm:$0xff]   ;;  %v1359_v6 = vld [vmem:[#allocation5 + $0x10] sm:$0xff]   ;;  %v1039_v8 = vld [vmem:[%s1680_s2] ss:$0 sm:$0xff] }
  0x4c   :  { %1135 = vmatpush3.bf16.msra.mxu0 %v1314_v21  ;;  %v1361_v38 = vld [vmem:[#allocation5 + $0x20] sm:$0xff]  }
  0x4d   :  { %1136 = vmatprep.subr.bf16.mxu0 %v1317_v24 }
  0x4e   :  { %1157 = vmatpush3.bf16.msra.mxu1 %v1316_v23 }
  0x4f   :  { %1158 = vmatprep.subr.bf16.mxu1 %v1319_v26 }
  0x50   :  { %1137 = vmatpush3.bf16.msra.mxu0 %v1318_v25 }
  0x51   :  { %1138 = vmatprep.subr.bf16.mxu0 %v1321_v28 }
  0x52   :  { %1159 = vmatpush3.bf16.msra.mxu1 %v1320_v27 }
  0x53   :  { %1160 = vmatprep.subr.bf16.mxu1 %v1323_v30 }
  0x54   :  { %1139 = vmatpush3.bf16.msra.mxu0 %v1322_v29 }
  0x55   :  { %1168 = vmatprep.subr.bf16.mxu0 %v1327_v35 }
  0x56   :  { %1161 = vmatpush3.bf16.msra.mxu1 %v1326_v34 }
  0x57   :  { %539 = vmatmul.mubr.bf16.vlgmr.msra.gmra.mrb[0].mxu0 %v1040_v32  ;;  %1219 = vmatprep.subr.bf16.mxu1 %v1480_v43 }
  0x58   :  { %1169 = vmatpush3.bf16.msra.mxu0 %v1330_v39  ;;  %618 = vmatprep.mubr.bf16.mxu0 %v1045_v53  ;;  %v1362_v39 = vld [vmem:[#allocation5 + $0x28] sm:$0xff]  }
  0x59   :  { %579 = vmatmul.mubr.bf16.vlgmr.msra.gmra.mrb[0].mxu1 %v1042_v37  ;;  %1170 = vmatprep.subr.bf16.mxu0 %v1331_v40  ;;  %v1360_v37 = vld [vmem:[#allocation5 + $0x18] sm:$0xff]   ;;  %v1363_v40 = vld [vmem:[#allocation5 + $0x30] sm:$0xff]  }
  0x5a   :  { %1221 = vmatprep.mubr.msk.bf16.mxu1 %vm1481_vm0, %v1480_v43  ;;  %1220 = vmatpush3.bf16.msra.mxu1 %v1345_v50 }
  0x5b   :  { %1225 = vmatprep.subr.bf16.mxu1 %v1480_v43 }
  0x5c   :  { %1171 = vmatpush3.bf16.msra.mxu0 %v1332_v41  ;;  %v1364_v41 = vld [vmem:[#allocation5 + $0x38] sm:$0xff]  }
  0x5d   :  { %1172 = vmatprep.subr.bf16.mxu0 %v1333_v42  ;;  %v1365_v42 = vld [vmem:[#allocation7] sm:$0xff]  }
  0x60   :  { %1173 = vmatpush3.bf16.msra.mxu0 %v1334_v44  ;;  %v1366_v44 = vld [vmem:[#allocation7 + $0x8] sm:$0xff]  }
  0x61   :  { %1174 = vmatprep.subr.bf16.mxu0 %v1335_v45  ;;  %1222 = vmatmul.mubr.msk.bf16.vlgmr.msra.gmra.mrb[4].mxu1 %vm502_vm1, %v1348_v54  ;;  %v1367_v45 = vld [vmem:[#allocation7 + $0x10] sm:$0xff]  }
  0x62   :  { %1241 = vmatprep.mubr.msk.bf16.mxu1 %vm1481_vm0, %v1480_v43  ;;  %1226 = vmatpush3.bf16.msra.mxu1 %v1349_v60  ;;  %v1370_v60 = vld [vmem:[#allocation7 + $0x28] sm:$0xff]  }
  0x63   :  { %1227 = vmatprep.subr.bf16.mxu1 %v1480_v43 }
  0x64   :  { %1175 = vmatpush3.bf16.msra.mxu0 %v1336_v46  ;;  %v1097_v46 = vld [vmem:[%s1682_s4] ss:$0 sm:$0xff] }
  0x65   :  { %1176 = vmatprep.subr.bf16.mxu0 %v1337_v47 }
  0x66   :  { %1228 = vmatpush3.bf16.msra.mxu1 %v1350_v61  ;;  %v1371_v61 = vld [vmem:[#allocation7 + $0x30] sm:$0xff]  }
  0x67   :  { %1229 = vmatprep.subr.bf16.mxu1 %v1480_v43 }
  0x68   :  { %1177 = vmatpush3.bf16.msra.mxu0 %v1338_v48 }
  0x69   :  { %1178 = vmatprep.subr.bf16.mxu0 %v1339_v49 }
  0x6a   :  { %1230 = vmatpush3.bf16.msra.mxu1 %v1351_v62  ;;  %v1372_v62 = vld [vmem:[#allocation7 + $0x38] sm:$0xff]  }
  0x6b   :  { %1231 = vmatprep.subr.bf16.mxu1 %v1480_v43 }
  0x6c   :  { %1179 = vmatpush3.bf16.msra.mxu0 %v1340_v52 }
  0x6d   :  { %1180 = vmatprep.subr.bf16.mxu0 %v1341_v55 }
  0x6e   :  { %1232 = vmatpush3.bf16.msra.mxu1 %v1352_v63  ;;  %v1106_v63 = vld [vmem:[%s1684_s6] ss:$0 sm:$0xff]  ;;  %s1482_s6 = smov [#allocation8]  }
  0x6f   :  { %1233 = vmatprep.subr.bf16.mxu1 %v1480_v43  ;;  %s1029_s27 = sshll.u32 %s1482_s6, 4  ;;  %s1030_s27 = int_to_ptr.vmem [resolvable:$true] %s1029_s27 }
  0x70   :  { %1181 = vmatpush3.bf16.msra.mxu0 %v1342_v56  ;;  %s1447_s28 = scalar_lea.vmem %s1030_s27, 128  ;;  %p1452_p11 = scmp.lt.s32.totalorder %s1030_s27, %s1030_s27 }
  0x71   :  { %1182 = vmatprep.subr.bf16.mxu0 %v1343_v57  ;;  %p1448_p10 = scmp.ne.s32.totalorder %s1030_s27, %s1447_s28  ;;  %p1453_p12 = scmp.lt.s32.totalorder %s1447_s28, %s1447_s28 }
  0x72   :  { %1234 = vmatpush3.bf16.msra.mxu1 %v1353_v0 }
  0x73   :  { %1235 = vmatprep.subr.bf16.mxu1 %v1480_v43  ;;  %p1454_p13 = por %p1453_p12, %p1452_p11 }
  0x74   :  { %1183 = vmatpush3.bf16.msra.mxu0 %v1344_v58  ;;  %v1368_v58 = vld [vmem:[#allocation7 + $0x18] sm:$0xff]  }
  0x75   :  { %1245 = vmatprep.subr.bf16.mxu0 %v1480_v43  ;;  %p1455_p0 = pnand %p1454_p13, %p1448_p10 }
  0x76   :  { %1236 = vmatpush3.bf16.msra.mxu1 %v1354_v1 }
  0x77   :  { %619 = vmatmul.mubr.bf16.vlgmr.msra.gmra.mrb[4].mxu0 %v1044_v59  ;;  %1237 = vmatprep.subr.bf16.mxu1 %v1480_v43  ;;  %v1369_v59 = vld [vmem:[#allocation7 + $0x20] sm:$0xff]  }
  0x78   :  { %1261 = vmatprep.mubr.msk.bf16.mxu0 %vm1481_vm0, %v1480_v43  ;;  %1246 = vmatpush3.bf16.msra.mxu0 %v1357_v4 }
  0x79   :  { %1247 = vmatprep.subr.bf16.mxu0 %v1480_v43 }
  0x7a   :  { %1238 = vmatpush3.bf16.msra.mxu1 %v1355_v2 }
  0x7b   :  { %1239 = vmatprep.subr.bf16.mxu1 %v1480_v43 }
  0x7c   :  { %1248 = vmatpush3.bf16.msra.mxu0 %v1358_v5 }
  0x7d   :  { %1249 = vmatprep.subr.bf16.mxu0 %v1480_v43 }
  0x7e   :  { %1240 = vmatpush3.bf16.msra.mxu1 %v1356_v3 }
  0x7f   :  { %1265 = vmatprep.subr.bf16.mxu1 %v1480_v43 }
  0x80   :  { %1250 = vmatpush3.bf16.msra.mxu0 %v1359_v6 }
  0x81   :  { %1251 = vmatprep.subr.bf16.mxu0 %v1480_v43 }
  0x84   :  { %1252 = vmatpush3.bf16.msra.mxu0 %v1360_v37 }
  0x85   :  { %1253 = vmatprep.subr.bf16.mxu0 %v1480_v43 }
  0x88   :  { %1254 = vmatpush3.bf16.msra.mxu0 %v1361_v38 }
  0x89   :  { %1255 = vmatprep.subr.bf16.mxu0 %v1480_v43 }
  0x8c   :  { %1256 = vmatpush3.bf16.msra.mxu0 %v1362_v39 }
  0x8d   :  { %1257 = vmatprep.subr.bf16.mxu0 %v1480_v43 }
  0x90   :  { %1258 = vmatpush3.bf16.msra.mxu0 %v1363_v40 }
  0x91   :  { %1259 = vmatprep.subr.bf16.mxu0 %v1480_v43 }
  0x94   :  { %1260 = vmatpush3.bf16.msra.mxu0 %v1364_v41 }
 0x12a   :  { %v1140_v7 = vpop.f32.mrb[0].mxu0 }
 0x12b   :  { %v1141_v9 = vpop.f32.mrb[1].mxu0 }
 0x12c   :  { %v1142_v10 = vadd.f32 %v1141_v9, %v1140_v7  ;;  %v1143_v11 = vpop.f32.mrb[2].mxu0  ;;  %v1162_v12 = vpop.f32.mrb[0].mxu1 }
 0x12d   :  { %v1144_v13 = vpop.f32.mrb[3].mxu0  ;;  %v1163_v14 = vpop.f32.mrb[1].mxu1 }
 0x12e   :  { %v541_v15 = vadd.f32 %v1142_v10, %v1039_v8  ;;  %v1164_v16 = vadd.f32 %v1163_v14, %v1162_v12  ;;  %v1165_v17 = vpop.f32.mrb[2].mxu1 }
 0x12f   :  { %v1166_v18 = vpop.f32.mrb[3].mxu1 }
 0x130   :  { %v581_v19 = vadd.f32 %v1164_v16, %v541_v15 }
 0x134   :  { %v660_v20 = vpop.f32.mrb[4].mxu1 }
 0x135   :  { %v1223_v21 = vpop.f32.mrb[5].mxu1 }
 0x136   :  { %v663_v22 = vpop.f32.mrb[6].mxu1 }
 0x137   :  { %v1224_v23 = vpop.f32.mrb[7].mxu1 }
 0x14a   :  { %v1184_v24 = vpop.f32.mrb[4].mxu0 }
 0x14b   :  { %v1185_v25 = vpop.f32.mrb[5].mxu0 }
 0x14c   :  { %v1186_v26 = vadd.f32 %v1185_v25, %v1184_v24  ;;  %v1187_v27 = vpop.f32.mrb[6].mxu0 }
 0x14d   :  { %v1188_v28 = vpop.f32.mrb[7].mxu0 }
 0x14e   :  { %v621_v29 = vadd.f32 %v1186_v26, %v581_v19 }
 0x150   :  { %v661_v30 = vadd.f32 %v660_v20, %v621_v29 }
 0x152   :  { %v667_v31 = vmul.f32 0.70710677, %v661_v30  ;;  %v666_v33 = vmul.f32 0.5, %v661_v30 }
 0x154   :  { %1373 = verf.f32 %v667_v31 }
 0x15e   :  { %v1374_v32 = vpop.eup %1373 }
 0x15f   :  { %v669_v34 = vadd.f32 1.0, %v1374_v32 }
 0x161   :  { %v670_v35 = vmul.f32 %v669_v34, %v666_v33 }
 0x163   :  { %v671_v36 = vpack.c.bf16 %v670_v35, %v670_v35 }
 0x165   :  { %1242 = vmatmul.mubr.bf16.vlgmr.msra.gmra.mrb[8].mxu1 %v671_v36 }
 0x166   :  { %1281 = vmatprep.mubr.msk.bf16.mxu1 %vm1481_vm0, %v1480_v43  ;;  %1266 = vmatpush3.bf16.msra.mxu1 %v1365_v42 }
 0x167   :  { %1267 = vmatprep.subr.bf16.mxu1 %v1480_v43 }
 0x16a   :  { %1268 = vmatpush3.bf16.msra.mxu1 %v1366_v44 }
 0x16b   :  { %1269 = vmatprep.subr.bf16.mxu1 %v1480_v43 }
 0x16e   :  { %1270 = vmatpush3.bf16.msra.mxu1 %v1367_v45 }
 0x16f   :  { %1271 = vmatprep.subr.bf16.mxu1 %v1480_v43 }
 0x172   :  { %1272 = vmatpush3.bf16.msra.mxu1 %v1368_v58 }
 0x173   :  { %1273 = vmatprep.subr.bf16.mxu1 %v1480_v43 }
 0x176   :  { %1274 = vmatpush3.bf16.msra.mxu1 %v1369_v59 }
 0x177   :  { %1275 = vmatprep.subr.bf16.mxu1 %v1480_v43 }
 0x17a   :  { %1276 = vmatpush3.bf16.msra.mxu1 %v1370_v60 }
 0x17b   :  { %1277 = vmatprep.subr.bf16.mxu1 %v1480_v43 }
 0x17e   :  { %1278 = vmatpush3.bf16.msra.mxu1 %v1371_v61 }
 0x17f   :  { %1279 = vmatprep.subr.bf16.mxu1 %v1480_v43  ;;  %v1115_v43 = vld [vmem:[%s1686_s8] ss:$0 sm:$0xff] }
 0x182   :  { %1280 = vmatpush3.bf16.msra.mxu1 %v1372_v62 }
 0x238   :  { %v777_v47 = vpop.f32.mrb[8].mxu1 }
 0x239   :  { %v778_v48 = vadd.f32 %v1097_v46, %v777_v47  ;;  %v1243_v49 = vpop.f32.mrb[9].mxu1 }
 0x23a   :  { %v780_v50 = vpop.f32.mrb[10].mxu1 }
 0x23b   :  { %v784_v51 = vmul.f32 0.70710677, %v778_v48  ;;  %v1244_v52 = vpop.f32.mrb[11].mxu1  ;;  %v783_v54 = vmul.f32 0.5, %v778_v48 }
 0x23d   :  { %1375 = verf.f32 %v784_v51 }
 0x247   :  { %v1376_v53 = vpop.eup %1375 }
 0x248   :  { %v786_v55 = vadd.f32 1.0, %v1376_v53 }
 0x24a   :  { %v787_v56 = vmul.f32 %v786_v55, %v783_v54 }
 0x24c   :  { %v788_v57 = vpack.c.bf16 %v787_v56, %v787_v56 }
 0x24e   :  { %1262 = vmatmul.mubr.bf16.vlgmr.msra.gmra.mrb[8].mxu0 %v788_v57 }
 0x321   :  { %v894_v0 = vpop.f32.mrb[8].mxu0 }
 0x322   :  { %v895_v1 = vadd.f32 %v1106_v63, %v894_v0  ;;  %v1263_v2 = vpop.f32.mrb[9].mxu0 }
 0x323   :  { %v897_v3 = vpop.f32.mrb[10].mxu0 }
 0x324   :  { %v901_v4 = vmul.f32 0.70710677, %v895_v1  ;;  %v1264_v5 = vpop.f32.mrb[11].mxu0  ;;  %v900_v7 = vmul.f32 0.5, %v895_v1 }
 0x326   :  { %1377 = verf.f32 %v901_v4 }
 0x330   :  { %v1378_v6 = vpop.eup %1377 }
 0x331   :  { %v903_v8 = vadd.f32 1.0, %v1378_v6 }
 0x333   :  { %v904_v9 = vmul.f32 %v903_v8, %v900_v7 }
 0x335   :  { %v905_v10 = vpack.c.bf16 %v904_v9, %v904_v9 }
 0x337   :  { %1282 = vmatmul.mubr.bf16.vlgmr.msra.gmra.mrb[12].mxu1 %v905_v10 }
 0x40a   :  { %v1011_v11 = vpop.f32.mrb[12].mxu1 }
 0x40b   :  { %v1012_v12 = vadd.f32 %v1115_v43, %v1011_v11  ;;  %v1283_v13 = vpop.f32.mrb[13].mxu1 }
 0x40c   :  { %v1014_v14 = vpop.f32.mrb[14].mxu1 }
 0x40d   :  { %v1018_v15 = vmul.f32 0.70710677, %v1012_v12  ;;  %v1284_v16 = vpop.f32.mrb[15].mxu1  ;;  %v1017_v18 = vmul.f32 0.5, %v1012_v12 }
 0x40f   :  { %1379 = verf.f32 %v1018_v15 }
 0x419   :  { %v1380_v17 = vpop.eup %1379 }
 0x41a   :  { %v1020_v19 = vadd.f32 1.0, %v1380_v17 }
 0x41c   :  { %v1021_v20 = vmul.f32 %v1020_v19, %v1017_v18 }
 0x41e   :  { %1022 = vst [vmem:[#allocation8] sm:$0xff] %v1021_v20 }
 0x41f   :  { %1458 = shalt.err (!%p1455_p0)
}
 0x420   :  { %s1459_s30 = scalar_lea.hbm %s1687_s9, 128 }
 0x421   :  { %p1460_p1 = scmp.ne.s32.totalorder %s1687_s9, %s1459_s30  ;;  %p1463_p2 = scmp.lt.u32.totalorder %s1459_s30, %s1687_s9 }
 0x423   :  { %p1465_p3 = pnand %p1463_p2, %p1460_p1 }
 0x425   :  { %1468 = shalt.err (!%p1465_p3)
}
 0x426   :  { %1032 = dma.vmem_to_hbm [thread:$0]  %s1030_s27, 128, %s1687_s9, [#allocation4]  }
 0x427   :  { %1473 = dma.done.wait [#allocation4], 128  }
 0x428   :  { %1474 = vsyncadd [#allocation4], 4294967168 }
 0x429   :  { %1036 = vsyncpa [#allocation3], 1 }
 0x42a   :  { %1037 = vsyncpa [#allocation6], 1 }
 0x42b   :  { %1038 = vsyncpa [#allocation4], 1 }

</bundles_post_ra>
